<compile_context>
chip_gen: v7x
topology: tpu7x:2x2x1
jax: 0.10.0
libtpu: 0.0.40
codegen_flags: <defaults>
</compile_context>

<pallas_src>
import math
import functools

import jax
import jax.numpy as jnp
from jax.experimental import pallas as pl
from jax.experimental.pallas import tpu as pltpu


# int32 two's-complement views of the usual 32-bit mixing constants.
_C1 = -2048144789   # 0x85EBCA6B
_C2 = -1028477387   # 0xC2B2AE35
_C3 = -1640531527   # 0x9E3779B9


def _shr(x, n):
    """Logical right shift on int32 vectors (portable: explicit splat operand)."""
    return jax.lax.shift_right_logical(x, jnp.broadcast_to(jnp.int32(n), x.shape))


def _fmix32(x):
    """murmur3 finalizer: good avalanche, only VPU int ops (mul/xor/shift)."""
    x = x ^ _shr(x, 16)
    x = x * jnp.int32(_C1)
    x = x ^ _shr(x, 13)
    x = x * jnp.int32(_C2)
    x = x ^ _shr(x, 16)
    return x


def _make_kernel(want_logits, want_mean, want_sample):
    """Build the kernel body with statically-gated output paths."""

    def kernel(seed_ref, x_ref, wt_ref, b_ref, *out_refs):
        refs = list(out_refs)
        logits_ref = refs.pop(0) if want_logits else None
        mean_ref = refs.pop(0) if want_mean else None
        sample_ref = refs.pop(0) if want_sample else None

        x = x_ref[...]                   # (TB, D)     f32
        wt = wt_ref[...]                 # (D, K_pad)  f32, lane-dense, resident
        b = b_ref[...]                   # (1, K_pad)  f32, padded lanes = -1e30

        # Linear head on the MXU: logits = x @ W^T + b (weight pre-transposed).
        logits = jnp.dot(x, wt, preferred_element_type=jnp.float32) + b
        if want_logits:
            logits_ref[...] = logits.astype(logits_ref.dtype)

        tile = pl.program_id(0)
        seed = seed_ref[0]

        def gumbel(salt):
            """Counter-based Gumbel(0,1) noise; no HBM streams, no Mosaic PRNG."""
            shape = logits.shape
            r = jax.lax.broadcasted_iota(jnp.int32, shape, 0)
            c = jax.lax.broadcasted_iota(jnp.int32, shape, 1)
            ctr = r * jnp.int32(shape[1]) + c
            # Mix seed, tile index and a per-draw salt with distinct odd
            # constants, then finalize per element (no overlapping streams
            # across adjacent seeds / tiles, independent draws per salt).
            h = (seed * jnp.int32(_C3)
                 + tile * jnp.int32(_C1)
                 + jnp.int32(salt) * jnp.int32(_C2))
            v = _fmix32(ctr ^ h)
            v = _fmix32(v + jnp.int32(salt))
            m24 = v & jnp.int32(0x00FFFFFF)                      # 24 uniform bits
            u = (m24.astype(jnp.float32) + 0.5) * jnp.float32(1.0 / 16777216.0)
            return -jnp.log(-jnp.log(u))                         # Gumbel(0,1)

        # ---- dist.mean: soft gumbel-softmax (tau = 1) --------------------
        if want_mean:
            y = logits + gumbel(1)
            y = y - jnp.max(y, axis=-1, keepdims=True)           # stable
            e = jnp.exp(y)
            # Exact divide (review: approx reciprocal broke exact normalization).
            mean = e / jnp.sum(e, axis=-1, keepdims=True)
            mean_ref[...] = mean.astype(mean_ref.dtype)

        # ---- dist.sample: hard one-hot ------------------------------------
        # argmax is invariant under softmax -> no exp/sum/divide here.
        # max + where + min tie-break (first index, matches torch.argmax) is
        # kept instead of jnp.argmax for robust Mosaic/interpret lowering.
        if want_sample:
            ys = logits + gumbel(2)
            m = jnp.max(ys, axis=-1, keepdims=True)
            col = jax.lax.broadcasted_iota(jnp.int32, ys.shape, 1)
            kpad = ys.shape[-1]
            first = jnp.min(jnp.where(ys == m, col, kpad), axis=-1, keepdims=True)
            sample_ref[...] = (col == first).astype(sample_ref.dtype)

        # TODO(synk): dist.log_prob raises NotImplementedError in the PyTorch
        # module, so it is intentionally not implemented here.

    return kernel


def _round_up(a, m):
    return (a + m - 1) // m * m


def gumbel_softmax_head(x, weight, bias, seed, *, tile_b=512,
                        return_logits=True, return_mean=True, return_sample=True,
                        mean_dtype=jnp.float32, sample_dtype=jnp.float32):
    """Fused GumbelSoftmaxHead forward.

    Args:
      x:      (B, D) f32 inputs.
      weight: (K, D) f32, torch.nn.Linear layout (out_features, in_features).
      bias:   (K,)   f32.
      seed:   python int / int32 scalar for the in-kernel Gumbel noise.
      return_logits / return_mean / return_sample: statically gate outputs —
        disabled paths are never computed nor written back.
      mean_dtype / sample_dtype: output dtypes (narrow to bf16/int8 to cut
        HBM writeback; defaults f32 match torch).

    Returns: (logits, mean, sample); disabled entries are None; enabled ones
      are (B, K) arrays.
    """
    assert return_logits or return_mean or return_sample
    B, D = x.shape
    K, D2 = weight.shape
    assert D == D2

    K_pad = _round_up(K, 128)                         # lane-dense class axis
    # Pick TB so the batch padding wastes at most one partial tile.
    nb = max(1, -(-B // tile_b))                      # number of batch tiles
    TB = _round_up(-(-B // nb), 8)                    # rows per tile (mult. of 8)
    B_pad = TB * nb

    NEG = jnp.float32(-1e30)
    # Pre-transpose + pad the weight once on the wrapper side (layout plumbing):
    # padded classes get zero weights AND -1e30 bias -> never selected.
    w_t = jnp.zeros((D, K_pad), jnp.float32).at[:, :K].set(
        weight.T.astype(jnp.float32))
    b_pad = jnp.full((1, K_pad), NEG, jnp.float32).at[0, :K].set(
        bias.astype(jnp.float32))
    x_pad = x.astype(jnp.float32)
    if B_pad != B:
        x_pad = jnp.pad(x_pad, ((0, B_pad - B), (0, 0)))
    seed_arr = jnp.asarray([seed], dtype=jnp.int32)

    out_shapes = []
    out_dtypes = []
    if return_logits:
        out_dtypes.append(jnp.float32)
    if return_mean:
        out_dtypes.append(mean_dtype)
    if return_sample:
        out_dtypes.append(sample_dtype)
    for dt in out_dtypes:
        out_shapes.append(jax.ShapeDtypeStruct((B_pad, K_pad), dt))
    out_shapes = tuple(out_shapes)
    row_spec = pl.BlockSpec((TB, K_pad), lambda i, *_: (i, 0))
    out_specs = tuple(row_spec for _ in out_shapes)

    # VMEM budget from the actual (double-buffered) footprint, capped for v7x.
    n_out = len(out_shapes)
    buf_bytes = 4 * (2 * TB * D + 2 * D * K_pad + 2 * K_pad
                     + n_out * 2 * TB * K_pad)
    vmem_limit = int(min(64 * 1024 * 1024,
                         max(16 * 1024 * 1024, 2 * buf_bytes)))

    kernel = _make_kernel(return_logits, return_mean, return_sample)

    outs = pl.pallas_call(
        kernel,
        out_shape=out_shapes,
        grid_spec=pltpu.PrefetchScalarGridSpec(
            num_scalar_prefetch=1,                             # seed -> SMEM
            grid=(nb,),
            in_specs=[
                pl.BlockSpec((TB, D), lambda i, *_: (i, 0)),      # x tile
                pl.BlockSpec((D, K_pad), lambda i, *_: (0, 0)),   # weight (resident)
                pl.BlockSpec((1, K_pad), lambda i, *_: (0, 0)),   # bias   (resident)
            ],
            out_specs=out_specs,
        ),
        compiler_params=pltpu.CompilerParams(
            dimension_semantics=("parallel",),                 # megacore-friendly
            vmem_limit_bytes=vmem_limit,
        ),
    )(seed_arr, x_pad, w_t, b_pad)

    outs = list(outs)
    logits = outs.pop(0)[:B, :K] if return_logits else None
    mean = outs.pop(0)[:B, :K] if return_mean else None
    sample = outs.pop(0)[:B, :K] if return_sample else None
    return logits, mean, sample


if __name__ == "__main__":
    key = jax.random.PRNGKey(0)
    B, D, K = 8, 32, 16          # batch, input_size, out_size (depth=0 head)
    kx, kw, kb = jax.random.split(key, 3)

    x = jax.random.normal(kx, (B, D), dtype=jnp.float32)

    # Deterministic torch.nn.Linear-style init: U(-1/sqrt(D), 1/sqrt(D))
    bound = 1.0 / math.sqrt(D)
    weight = jax.random.uniform(kw, (K, D), minval=-bound, maxval=bound,
                                dtype=jnp.float32)
    bias = jax.random.uniform(kb, (K,), minval=-bound, maxval=bound,
                              dtype=jnp.float32)

    logits, mean, sample = gumbel_softmax_head(x, weight, bias, seed=1234)
    jax.block_until_ready((logits, mean, sample))

    # --- checks -----------------------------------------------------------
    # Linear head is exactly reproducible.
    ref_logits = x @ weight.T + bias
    assert jnp.allclose(logits, ref_logits, atol=1e-5, rtol=1e-5)

    # Gumbel noise is drawn in-kernel, so check distributional invariants:
    # mean is a valid softmax output; sample is a strict one-hot per row.
    assert bool(jnp.all(mean >= 0.0)) and bool(jnp.all(mean <= 1.0))
    assert jnp.allclose(jnp.sum(mean, axis=-1), 1.0, atol=1e-5)
    assert bool(jnp.all((sample == 0.0) | (sample == 1.0)))
    assert jnp.allclose(jnp.sum(sample, axis=-1), 1.0)
    assert sample.shape == (B, K) and mean.shape == (B, K)

    # Gated call: sample-only path (skips logits store and the softmax/mean
    # path entirely -> less EUP work and 2/3 less HBM writeback).
    _, _, sample_only = gumbel_softmax_head(
        x, weight, bias, seed=1234,
        return_logits=False, return_mean=False, return_sample=True)
    jax.block_until_ready(sample_only)
    assert sample_only.shape == (B, K)
    assert jnp.allclose(jnp.sum(sample_only, axis=-1), 1.0)

    print("KERNEL_OK")
</pallas_src>

<mosaic_0001>
module attributes {stable_mosaic.version = 11 : i64} {
  func.func @kernel(%arg0: i32, %arg1: memref<1xi32, #tpu.memory_space<smem>>, %arg2: memref<8x32xf32, #tpu.memory_space<vmem>>, %arg3: memref<32x128xf32, #tpu.memory_space<vmem>>, %arg4: memref<1x128xf32, #tpu.memory_space<vmem>>, %arg5: memref<8x128xf32, #tpu.memory_space<vmem>>, %arg6: memref<8x128xf32, #tpu.memory_space<vmem>>, %arg7: memref<8x128xf32, #tpu.memory_space<vmem>>) attributes {dimension_semantics = [#tpu.dimension_semantics<parallel>], iteration_bounds = array<i64: 1>, scalar_prefetch = 1 : i64, scratch_operands = 0 : i64, tpu.core_type = #tpu.core_type<tc>, window_params = [{transform_indices = @transform_0, window_bounds = array<i64: 8, 32>}, {pipeline_mode = #tpu.pipeline_mode<synchronous>, transform_indices = @transform_1, window_bounds = array<i64: 32, 128>}, {pipeline_mode = #tpu.pipeline_mode<synchronous>, transform_indices = @transform_2, window_bounds = array<i64: 1, 128>}, {transform_indices = @transform_3, window_bounds = array<i64: 8, 128>}, {transform_indices = @transform_4, window_bounds = array<i64: 8, 128>}, {transform_indices = @transform_5, window_bounds = array<i64: 8, 128>}]} {
    %c0 = arith.constant 0 : index
    %c0_0 = arith.constant 0 : index
    %0 = vector.load %arg2[%c0, %c0_0] : memref<8x32xf32, #tpu.memory_space<vmem>>, vector<8x32xf32>
    %c0_1 = arith.constant 0 : index
    %c0_2 = arith.constant 0 : index
    %1 = vector.load %arg3[%c0_1, %c0_2] : memref<32x128xf32, #tpu.memory_space<vmem>>, vector<32x128xf32>
    %c0_3 = arith.constant 0 : index
    %c0_4 = arith.constant 0 : index
    %2 = vector.load %arg4[%c0_3, %c0_4] : memref<1x128xf32, #tpu.memory_space<vmem>>, vector<1x128xf32>
    %cst = arith.constant dense<0.000000e+00> : vector<8x128xf32>
    %3 = tpu.matmul %0, %1, %cst {dimension_numbers = #tpu.dot_dimension_numbers<[1], [0], [0], [1], [0, 0, 1, 1], [], []>} : vector<8x32xf32>, vector<32x128xf32>, vector<8x128xf32> -> vector<8x128xf32>
    %4 = vector.broadcast %2 : vector<1x128xf32> to vector<8x128xf32>
    %5 = arith.addf %3, %4 : vector<8x128xf32>
    %c0_5 = arith.constant 0 : index
    %c0_6 = arith.constant 0 : index
    %6 = vector.load %arg5[%c0_5, %c0_6] : memref<8x128xf32, #tpu.memory_space<vmem>>, vector<8x128xf32>
    tpu.vector_store %arg5[%c0_5, %c0_6], %5 {strides = array<i32>} : memref<8x128xf32, #tpu.memory_space<vmem>>, vector<8x128xf32>,
    %c0_7 = arith.constant 0 : index
    %7 = memref.load %arg1[%c0_7] : memref<1xi32, #tpu.memory_space<smem>>
    %8 = tpu.iota {dimensions = array<i32: 0>} : vector<8x128xi32>
    %9 = tpu.iota {dimensions = array<i32: 1>} : vector<8x128xi32>
    %c128_i32 = arith.constant 128 : i32
    %10 = vector.broadcast %c128_i32 : i32 to vector<8x128xi32>
    %11 = arith.muli %8, %10 : vector<8x128xi32>
    %12 = arith.addi %11, %9 : vector<8x128xi32>
    %c-1640531527_i32 = arith.constant -1640531527 : i32
    %13 = arith.muli %7, %c-1640531527_i32 : i32
    %c-2048144789_i32 = arith.constant -2048144789 : i32
    %14 = arith.muli %arg0, %c-2048144789_i32 : i32
    %15 = arith.addi %13, %14 : i32
    %c1_i32 = arith.constant 1 : i32
    %c-1028477387_i32 = arith.constant -1028477387 : i32
    %16 = arith.muli %c1_i32, %c-1028477387_i32 : i32
    %17 = arith.addi %15, %16 : i32
    %18 = vector.broadcast %17 : i32 to vector<8x128xi32>
    %19 = arith.xori %12, %18 : vector<8x128xi32>
    %c16_i32 = arith.constant 16 : i32
    %20 = vector.broadcast %c16_i32 : i32 to vector<8x128xi32>
    %21 = arith.shrui %19, %20 : vector<8x128xi32>
    %22 = arith.xori %19, %21 : vector<8x128xi32>
    %c-2048144789_i32_8 = arith.constant -2048144789 : i32
    %23 = vector.broadcast %c-2048144789_i32_8 : i32 to vector<8x128xi32>
    %24 = arith.muli %22, %23 : vector<8x128xi32>
    %c13_i32 = arith.constant 13 : i32
    %25 = vector.broadcast %c13_i32 : i32 to vector<8x128xi32>
    %26 = arith.shrui %24, %25 : vector<8x128xi32>
    %27 = arith.xori %24, %26 : vector<8x128xi32>
    %c-1028477387_i32_9 = arith.constant -1028477387 : i32
    %28 = vector.broadcast %c-1028477387_i32_9 : i32 to vector<8x128xi32>
    %29 = arith.muli %27, %28 : vector<8x128xi32>
    %c16_i32_10 = arith.constant 16 : i32
    %30 = vector.broadcast %c16_i32_10 : i32 to vector<8x128xi32>
    %31 = arith.shrui %29, %30 : vector<8x128xi32>
    %32 = arith.xori %29, %31 : vector<8x128xi32>
    %c1_i32_11 = arith.constant 1 : i32
    %33 = vector.broadcast %c1_i32_11 : i32 to vector<8x128xi32>
    %34 = arith.addi %32, %33 : vector<8x128xi32>
    %c16_i32_12 = arith.constant 16 : i32
    %35 = vector.broadcast %c16_i32_12 : i32 to vector<8x128xi32>
    %36 = arith.shrui %34, %35 : vector<8x128xi32>
    %37 = arith.xori %34, %36 : vector<8x128xi32>
    %c-2048144789_i32_13 = arith.constant -2048144789 : i32
    %38 = vector.broadcast %c-2048144789_i32_13 : i32 to vector<8x128xi32>
    %39 = arith.muli %37, %38 : vector<8x128xi32>
    %c13_i32_14 = arith.constant 13 : i32
    %40 = vector.broadcast %c13_i32_14 : i32 to vector<8x128xi32>
    %41 = arith.shrui %39, %40 : vector<8x128xi32>
    %42 = arith.xori %39, %41 : vector<8x128xi32>
    %c-1028477387_i32_15 = arith.constant -1028477387 : i32
    %43 = vector.broadcast %c-1028477387_i32_15 : i32 to vector<8x128xi32>
    %44 = arith.muli %42, %43 : vector<8x128xi32>
    %c16_i32_16 = arith.constant 16 : i32
    %45 = vector.broadcast %c16_i32_16 : i32 to vector<8x128xi32>
    %46 = arith.shrui %44, %45 : vector<8x128xi32>
    %47 = arith.xori %44, %46 : vector<8x128xi32>
    %c16777215_i32 = arith.constant 16777215 : i32
    %48 = vector.broadcast %c16777215_i32 : i32 to vector<8x128xi32>
    %49 = arith.andi %47, %48 : vector<8x128xi32>
    %50 = arith.sitofp %49 : vector<8x128xi32> to vector<8x128xf32>
    %cst_17 = arith.constant 5.000000e-01 : f32
    %51 = vector.broadcast %cst_17 : f32 to vector<8x128xf32>
    %52 = arith.addf %50, %51 : vector<8x128xf32>
    %cst_18 = arith.constant 5.96046448E-8 : f32
    %53 = vector.broadcast %cst_18 : f32 to vector<8x128xf32>
    %54 = arith.mulf %52, %53 : vector<8x128xf32>
    %55 = math.log %54 : vector<8x128xf32>
    %cst_19 = arith.constant 0.000000e+00 : f32
    %56 = vector.broadcast %cst_19 : f32 to vector<8x128xf32>
    %57 = arith.subf %56, %55 : vector<8x128xf32>
    %58 = math.log %57 : vector<8x128xf32>
    %cst_20 = arith.constant 0.000000e+00 : f32
    %59 = vector.broadcast %cst_20 : f32 to vector<8x128xf32>
    %60 = arith.subf %59, %58 : vector<8x128xf32>
    %61 = arith.addf %5, %60 : vector<8x128xf32>
    %cst_21 = arith.constant dense<0xFF800000> : vector<8xf32>
    %62 = vector.multi_reduction <maximumf>, %61, %cst_21 [1] : vector<8x128xf32> to vector<8xf32>
    %63 = vector.shape_cast %62 : vector<8xf32> to vector<8x1xf32>
    %64 = vector.broadcast %63 : vector<8x1xf32> to vector<8x128xf32>
    %65 = arith.subf %61, %64 : vector<8x128xf32>
    %66 = math.exp %65 : vector<8x128xf32>
    %cst_22 = arith.constant dense<0.000000e+00> : vector<8xf32>
    %67 = vector.multi_reduction <add>, %66, %cst_22 [1] : vector<8x128xf32> to vector<8xf32>
    %68 = vector.shape_cast %67 : vector<8xf32> to vector<8x1xf32>
    %69 = vector.broadcast %68 : vector<8x1xf32> to vector<8x128xf32>
    %70 = arith.divf %66, %69 : vector<8x128xf32>
    %c0_23 = arith.constant 0 : index
    %c0_24 = arith.constant 0 : index
    %71 = vector.load %arg6[%c0_23, %c0_24] : memref<8x128xf32, #tpu.memory_space<vmem>>, vector<8x128xf32>
    tpu.vector_store %arg6[%c0_23, %c0_24], %70 {strides = array<i32>} : memref<8x128xf32, #tpu.memory_space<vmem>>, vector<8x128xf32>,
    %72 = tpu.iota {dimensions = array<i32: 0>} : vector<8x128xi32>
    %73 = tpu.iota {dimensions = array<i32: 1>} : vector<8x128xi32>
    %c128_i32_25 = arith.constant 128 : i32
    %74 = vector.broadcast %c128_i32_25 : i32 to vector<8x128xi32>
    %75 = arith.muli %72, %74 : vector<8x128xi32>
    %76 = arith.addi %75, %73 : vector<8x128xi32>
    %c-1640531527_i32_26 = arith.constant -1640531527 : i32
    %77 = arith.muli %7, %c-1640531527_i32_26 : i32
    %c-2048144789_i32_27 = arith.constant -2048144789 : i32
    %78 = arith.muli %arg0, %c-2048144789_i32_27 : i32
    %79 = arith.addi %77, %78 : i32
    %c2_i32 = arith.constant 2 : i32
    %c-1028477387_i32_28 = arith.constant -1028477387 : i32
    %80 = arith.muli %c2_i32, %c-1028477387_i32_28 : i32
    %81 = arith.addi %79, %80 : i32
    %82 = vector.broadcast %81 : i32 to vector<8x128xi32>
    %83 = arith.xori %76, %82 : vector<8x128xi32>
    %c16_i32_29 = arith.constant 16 : i32
    %84 = vector.broadcast %c16_i32_29 : i32 to vector<8x128xi32>
    %85 = arith.shrui %83, %84 : vector<8x128xi32>
    %86 = arith.xori %83, %85 : vector<8x128xi32>
    %c-2048144789_i32_30 = arith.constant -2048144789 : i32
    %87 = vector.broadcast %c-2048144789_i32_30 : i32 to vector<8x128xi32>
    %88 = arith.muli %86, %87 : vector<8x128xi32>
    %c13_i32_31 = arith.constant 13 : i32
    %89 = vector.broadcast %c13_i32_31 : i32 to vector<8x128xi32>
    %90 = arith.shrui %88, %89 : vector<8x128xi32>
    %91 = arith.xori %88, %90 : vector<8x128xi32>
    %c-1028477387_i32_32 = arith.constant -1028477387 : i32
    %92 = vector.broadcast %c-1028477387_i32_32 : i32 to vector<8x128xi32>
    %93 = arith.muli %91, %92 : vector<8x128xi32>
    %c16_i32_33 = arith.constant 16 : i32
    %94 = vector.broadcast %c16_i32_33 : i32 to vector<8x128xi32>
    %95 = arith.shrui %93, %94 : vector<8x128xi32>
    %96 = arith.xori %93, %95 : vector<8x128xi32>
    %c2_i32_34 = arith.constant 2 : i32
    %97 = vector.broadcast %c2_i32_34 : i32 to vector<8x128xi32>
    %98 = arith.addi %96, %97 : vector<8x128xi32>
    %c16_i32_35 = arith.constant 16 : i32
    %99 = vector.broadcast %c16_i32_35 : i32 to vector<8x128xi32>
    %100 = arith.shrui %98, %99 : vector<8x128xi32>
    %101 = arith.xori %98, %100 : vector<8x128xi32>
    %c-2048144789_i32_36 = arith.constant -2048144789 : i32
    %102 = vector.broadcast %c-2048144789_i32_36 : i32 to vector<8x128xi32>
    %103 = arith.muli %101, %102 : vector<8x128xi32>
    %c13_i32_37 = arith.constant 13 : i32
    %104 = vector.broadcast %c13_i32_37 : i32 to vector<8x128xi32>
    %105 = arith.shrui %103, %104 : vector<8x128xi32>
    %106 = arith.xori %103, %105 : vector<8x128xi32>
    %c-1028477387_i32_38 = arith.constant -1028477387 : i32
    %107 = vector.broadcast %c-1028477387_i32_38 : i32 to vector<8x128xi32>
    %108 = arith.muli %106, %107 : vector<8x128xi32>
    %c16_i32_39 = arith.constant 16 : i32
    %109 = vector.broadcast %c16_i32_39 : i32 to vector<8x128xi32>
    %110 = arith.shrui %108, %109 : vector<8x128xi32>
    %111 = arith.xori %108, %110 : vector<8x128xi32>
    %c16777215_i32_40 = arith.constant 16777215 : i32
    %112 = vector.broadcast %c16777215_i32_40 : i32 to vector<8x128xi32>
    %113 = arith.andi %111, %112 : vector<8x128xi32>
    %114 = arith.sitofp %113 : vector<8x128xi32> to vector<8x128xf32>
    %cst_41 = arith.constant 5.000000e-01 : f32
    %115 = vector.broadcast %cst_41 : f32 to vector<8x128xf32>
    %116 = arith.addf %114, %115 : vector<8x128xf32>
    %cst_42 = arith.constant 5.96046448E-8 : f32
    %117 = vector.broadcast %cst_42 : f32 to vector<8x128xf32>
    %118 = arith.mulf %116, %117 : vector<8x128xf32>
    %119 = math.log %118 : vector<8x128xf32>
    %cst_43 = arith.constant 0.000000e+00 : f32
    %120 = vector.broadcast %cst_43 : f32 to vector<8x128xf32>
    %121 = arith.subf %120, %119 : vector<8x128xf32>
    %122 = math.log %121 : vector<8x128xf32>
    %cst_44 = arith.constant 0.000000e+00 : f32
    %123 = vector.broadcast %cst_44 : f32 to vector<8x128xf32>
    %124 = arith.subf %123, %122 : vector<8x128xf32>
    %125 = arith.addf %5, %124 : vector<8x128xf32>
    %cst_45 = arith.constant dense<0xFF800000> : vector<8xf32>
    %126 = vector.multi_reduction <maximumf>, %125, %cst_45 [1] : vector<8x128xf32> to vector<8xf32>
    %127 = vector.shape_cast %126 : vector<8xf32> to vector<8x1xf32>
    %128 = tpu.iota {dimensions = array<i32: 1>} : vector<8x128xi32>
    %129 = vector.broadcast %127 : vector<8x1xf32> to vector<8x128xf32>
    %130 = arith.cmpf oeq, %125, %129 : vector<8x128xf32>
    %c128_i32_46 = arith.constant 128 : i32
    %131 = vector.broadcast %c128_i32_46 : i32 to vector<8x128xi32>
    %132 = arith.select %130, %128, %131 : vector<8x128xi1>, vector<8x128xi32>
    %cst_47 = arith.constant dense<2147483647> : vector<8xi32>
    %133 = vector.multi_reduction <minsi>, %132, %cst_47 [1] : vector<8x128xi32> to vector<8xi32>
    %134 = vector.shape_cast %133 : vector<8xi32> to vector<8x1xi32>
    %135 = vector.broadcast %134 : vector<8x1xi32> to vector<8x128xi32>
    %136 = arith.cmpi eq, %128, %135 : vector<8x128xi32>
    %137 = arith.extui %136 : vector<8x128xi1> to vector<8x128xi32>
    %138 = arith.sitofp %137 : vector<8x128xi32> to vector<8x128xf32>
    %c0_48 = arith.constant 0 : index
    %c0_49 = arith.constant 0 : index
    %139 = vector.load %arg7[%c0_48, %c0_49] : memref<8x128xf32, #tpu.memory_space<vmem>>, vector<8x128xf32>
    tpu.vector_store %arg7[%c0_48, %c0_49], %138 {strides = array<i32>} : memref<8x128xf32, #tpu.memory_space<vmem>>, vector<8x128xf32>,
    return
  }
  func.func @transform_0(%arg0: i32, %arg1: memref<1xi32, #tpu.memory_space<smem>>) -> (i32, i32) {
    %c0_i32 = arith.constant 0 : i32
    %c0_i32_0 = arith.constant 0 : i32
    return %arg0, %c0_i32 : i32, i32
  }
  func.func @transform_1(%arg0: i32, %arg1: memref<1xi32, #tpu.memory_space<smem>>) -> (i32, i32) {
    %c0_i32 = arith.constant 0 : i32
    %c0_i32_0 = arith.constant 0 : i32
    %c0_i32_1 = arith.constant 0 : i32
    return %c0_i32, %c0_i32_0 : i32, i32
  }
  func.func @transform_2(%arg0: i32, %arg1: memref<1xi32, #tpu.memory_space<smem>>) -> (i32, i32) {
    %c0_i32 = arith.constant 0 : i32
    %c0_i32_0 = arith.constant 0 : i32
    %c0_i32_1 = arith.constant 0 : i32
    return %c0_i32, %c0_i32_0 : i32, i32
  }
  func.func @transform_3(%arg0: i32, %arg1: memref<1xi32, #tpu.memory_space<smem>>) -> (i32, i32) {
    %c0_i32 = arith.constant 0 : i32
    %c0_i32_0 = arith.constant 0 : i32
    return %arg0, %c0_i32 : i32, i32
  }
  func.func @transform_4(%arg0: i32, %arg1: memref<1xi32, #tpu.memory_space<smem>>) -> (i32, i32) {
    %c0_i32 = arith.constant 0 : i32
    %c0_i32_0 = arith.constant 0 : i32
    return %arg0, %c0_i32 : i32, i32
  }
  func.func @transform_5(%arg0: i32, %arg1: memref<1xi32, #tpu.memory_space<smem>>) -> (i32, i32) {
    %c0_i32 = arith.constant 0 : i32
    %c0_i32_0 = arith.constant 0 : i32
    return %arg0, %c0_i32 : i32, i32
  }
}

</mosaic_0001>

<bundles_post_ra>
// kernel: tpu_custom_call.1
= control target key start
LH: loop header
LB: loop body
LE: loop exit
PB: predicated region body
PF: predicated region fallthrough
CT: control target
= control target key end

     0   :  { %13 = vsyncpa [#allocation5], 0  ;;  %s571_s0 = inlined_call_operand.<no memory space> [shape: s32[1], index: 0, kind: input, shape index: {}]   ;;  %s572_s1 = inlined_call_operand.hbm [shape: f32[8,32], index: 1, kind: input, shape index: {}]   ;;  %s573_s2 = inlined_call_operand.hbm [shape: f32[32,128], index: 2, kind: input, shape index: {}]   ;;  %s574_s3 = inlined_call_operand.vmem [shape: f32[1,128], index: 3, kind: input, shape index: {}]   ;;  %s575_s4 = inlined_call_operand.hbm [shape: f32[8,128], index: 4, kind: output, shape index: {0}]   ;;  %s576_s5 = inlined_call_operand.hbm [shape: f32[8,128], index: 5, kind: output, shape index: {1}]   ;;  %s577_s6 = inlined_call_operand.hbm [shape: f32[8,128], index: 6, kind: output, shape index: {2}]  }
   0x1   :  { %14 = vsyncpa [#allocation8], 0 }
   0x2   :  { %15 = vsyncpa [#allocation6], 0 }
   0x3   :  { %16 = vsyncpa [#allocation11], 0  ;;  %s446_s21 = smov [#allocation4]   ;;  %s447_s23 = smov [#allocation7]  }
   0x4   :  { %s23_s22 = sshll.u32 %s446_s21, 4  ;;  %s32_s24 = sshll.u32 %s447_s23, 4  ;;  %s24_s22 = int_to_ptr.vmem [resolvable:$true] %s23_s22  ;;  %s491_s24 = int_to_ptr.vmem [resolvable:$true] %s32_s24 }
   0x5   :  { %s328_s27 = scalar_lea.hbm %s572_s1, 128 }
   0x6   :  { %p329_p0 = scmp.ne.s32.totalorder %s572_s1, %s328_s27  ;;  %p332_p1 = scmp.lt.u32.totalorder %s328_s27, %s572_s1 }
   0x8   :  { %p334_p2 = pnand %p332_p1, %p329_p0 }
   0xa   :  { %337 = shalt.err (!%p334_p2)
}
   0xb   :  { %s338_s8 = scalar_lea.vmem %s24_s22, 128  ;;  %p343_p4 = scmp.lt.s32.totalorder %s24_s22, %s24_s22 }
   0xc   :  { %p339_p3 = scmp.ne.s32.totalorder %s24_s22, %s338_s8  ;;  %p344_p5 = scmp.lt.s32.totalorder %s338_s8, %s338_s8 }
   0xe   :  { %p345_p6 = por %p344_p5, %p343_p4 }
  0x10   :  { %p346_p7 = pnand %p345_p6, %p339_p3 }
  0x12   :  { %349 = shalt.err (!%p346_p7)
}
  0x13   :  { %26 = dma.hbm_to_vmem [thread:$0]  %s572_s1, 128, %s24_s22, [#allocation5]  }
  0x14   :  { %s350_s13 = scalar_lea.hbm %s573_s2, 512 }
  0x15   :  { %p351_p8 = scmp.ne.s32.totalorder %s573_s2, %s350_s13  ;;  %p354_p9 = scmp.lt.u32.totalorder %s350_s13, %s573_s2 }
  0x17   :  { %p356_p10 = pnand %p354_p9, %p351_p8 }
  0x19   :  { %359 = shalt.err (!%p356_p10)
}
  0x1a   :  { %s360_s18 = scalar_lea.vmem %s491_s24, 512  ;;  %p365_p12 = scmp.lt.s32.totalorder %s491_s24, %s491_s24 }
  0x1b   :  { %p361_p11 = scmp.ne.s32.totalorder %s491_s24, %s360_s18  ;;  %p366_p13 = scmp.lt.s32.totalorder %s360_s18, %s360_s18 }
  0x1d   :  { %p367_p0 = por %p366_p13, %p365_p12 }
  0x1f   :  { %p368_p1 = pnand %p367_p0, %p361_p11 }
  0x21   :  { %371 = shalt.err (!%p368_p1)
}
  0x22   :  { %s448_s1 = smov 128   ;;  %s449_s19 = smov 8  }
  0x23   :  { %38 = dma.hbm_to_vmem [thread:$0]  %s573_s2, 512, %s491_s24, [#allocation8], %s448_s1, %s448_s1, %s449_s19  }
  0x24   :  { %438 = dma.done.wait [#allocation5], 128  }
  0x25   :  { %439 = vsyncadd [#allocation5], 4294967168 }
  0x26   :  { %440 = dma.done.wait [#allocation8], 512  }
  0x27   :  { %441 = vsyncadd [#allocation8], 4294966784  ;;  %v450_v0 = vmov 0.0|0.0   ;;  %vm451_vm0 = vmmov 0   ;;  %v452_v1 = vmov 0.0   ;;  %v48_v2 = vld [vmem:[#allocation7] sm:$0xff]  ;;  %v135_v9 = vlaneseq }
  0x28   :  { %300 = vmatprep.subr.bf16.mxu0 %v450_v0  ;;  %297 = vmatprep.mubr.msk.f32.mxu0 %vm451_vm0, %v452_v1  ;;  %v49_v3 = vld [vmem:[#allocation7 + $0x8] sm:$0xff]  ;;  %v50_v4 = vld [vmem:[#allocation7 + $0x10] sm:$0xff]  ;;  %v51_v6 = vld [vmem:[#allocation7 + $0x18] sm:$0xff]  ;;  %vm59_vm1 = vcmask 261120   ;;  %s141_s23 = smul.u32 2654435769, %s571_s0 }
  0x29   :  { %v301_v5 = vpack.c.bf16 %v49_v3, %v48_v2  ;;  %v304_v7 = vpack.c.bf16 %v51_v6, %v50_v4  ;;  %v47_v8 = vld [vmem:[#allocation4] sm:$0xff]  ;;  %v136_v10 = vshrl.u32 %v135_v9, 7  ;;  %v526_v11 = vand.u32 127, %v135_v9  ;;  %s454_s28 = smov [#allocation9]  }
  0x2a   :  { %s185_s24 = sadd.s32 2238012522, %s141_s23  ;;  %s144_s25 = sadd.s32 3266489909, %s141_s23  ;;  %v281_v6 = vld [vmem:[%s574_s3] ss:$0 sm:$0xff] }
  0x2b   :  { %302 = vmatpush3.bf16.msra.mxu0 %v301_v5  ;;  %v139_v12 = vmul.u32 128, %v136_v10  ;;  %v186_v14 = vstv %s185_s24  ;;  %v145_v16 = vstv %s144_s25  ;;  %s453_s3 = smov [#allocation10]   ;;  %s244_s29 = sshll.u32 %s454_s28, 4  ;;  %s245_s29 = int_to_ptr.vmem [resolvable:$true] %s244_s29 }
  0x2c   :  { %303 = vmatprep.subr.bf16.mxu0 %v450_v0  ;;  %s254_s27 = sshll.u32 %s453_s3, 4  ;;  %s372_s30 = scalar_lea.vmem %s245_s29, 128  ;;  %s255_s27 = int_to_ptr.vmem [resolvable:$true] %s254_s27 }
  0x2d   :  { %v140_v13 = vadd.s32 %v139_v12, %v526_v11  ;;  %p373_p2 = scmp.ne.s32.totalorder %s245_s29, %s372_s30  ;;  %p377_p3 = scmp.lt.s32.totalorder %s245_s29, %s245_s29 }
  0x2e   :  { %p378_p4 = scmp.lt.s32.totalorder %s372_s30, %s372_s30 }
  0x2f   :  { %305 = vmatpush3.bf16.msra.mxu0 %v304_v7  ;;  %v187_v15 = vxor.u32 %v186_v14, %v140_v13  ;;  %v146_v18 = vxor.u32 %v145_v16, %v140_v13 }
  0x30   :  { %p379_p5 = por %p378_p4, %p377_p3 }
  0x31   :  { %v188_v17 = vshrl.u32 %v187_v15, 16  ;;  %v147_v20 = vshrl.u32 %v146_v18, 16 }
  0x32   :  { %298 = vmatmul.mubr.msk.f32.vlgmr.msra.gmra.mrb[0].mxu0 %vm59_vm1, %v47_v8  ;;  %p380_p6 = pnand %p379_p5, %p373_p2 }
  0x33   :  { %v189_v19 = vxor.u32 %v188_v17, %v187_v15  ;;  %v148_v22 = vxor.u32 %v147_v20, %v146_v18 }
  0x35   :  { %v190_v21 = vmul.u32 2246822507, %v189_v19  ;;  %v149_v24 = vmul.u32 2246822507, %v148_v22 }
  0x37   :  { %v191_v23 = vshrl.u32 %v190_v21, 13  ;;  %v150_v26 = vshrl.u32 %v149_v24, 13 }
  0x39   :  { %v192_v25 = vxor.u32 %v191_v23, %v190_v21  ;;  %v151_v28 = vxor.u32 %v150_v26, %v149_v24 }
  0x3b   :  { %v193_v27 = vmul.u32 3266489909, %v192_v25  ;;  %v152_v30 = vmul.u32 3266489909, %v151_v28 }
  0x3d   :  { %v194_v29 = vshrl.u32 %v193_v27, 16  ;;  %v153_v32 = vshrl.u32 %v152_v30, 16 }
  0x3f   :  { %v195_v31 = vxor.u32 %v194_v29, %v193_v27  ;;  %v154_v34 = vxor.u32 %v153_v32, %v152_v30 }
  0x41   :  { %v196_v33 = vadd.s32 2, %v195_v31  ;;  %v155_v36 = vadd.s32 1, %v154_v34 }
  0x43   :  { %v197_v35 = vshrl.u32 %v196_v33, 16  ;;  %v156_v38 = vshrl.u32 %v155_v36, 16 }
  0x45   :  { %v198_v37 = vxor.u32 %v197_v35, %v196_v33  ;;  %v157_v40 = vxor.u32 %v156_v38, %v155_v36 }
  0x47   :  { %v199_v39 = vmul.u32 2246822507, %v198_v37  ;;  %v158_v42 = vmul.u32 2246822507, %v157_v40 }
  0x49   :  { %v200_v41 = vshrl.u32 %v199_v39, 13  ;;  %v159_v44 = vshrl.u32 %v158_v42, 13 }
  0x4b   :  { %v201_v43 = vxor.u32 %v200_v41, %v199_v39  ;;  %v160_v46 = vxor.u32 %v159_v44, %v158_v42 }
  0x4d   :  { %v202_v45 = vmul.u32 3266489909, %v201_v43  ;;  %v161_v48 = vmul.u32 3266489909, %v160_v46 }
  0x4f   :  { %v203_v47 = vshrl.u32 %v202_v45, 16  ;;  %v162_v50 = vshrl.u32 %v161_v48, 16 }
  0x51   :  { %v204_v49 = vxor.u32 %v203_v47, %v202_v45  ;;  %v163_v52 = vxor.u32 %v162_v50, %v161_v48 }
  0x53   :  { %v205_v51 = vand.u32 16777215, %v204_v49  ;;  %v164_v54 = vand.u32 16777215, %v163_v52 }
  0x55   :  { %v206_v53 = vcvt.s32.f32 %v205_v51  ;;  %v165_v56 = vcvt.s32.f32 %v164_v54 }
  0x57   :  { %v207_v55 = vadd.f32 0.5, %v206_v53  ;;  %v166_v58 = vadd.f32 0.5, %v165_v56 }
  0x59   :  { %v208_v57 = vmul.f32 5.9604645e-08, %v207_v55  ;;  %v167_v59 = vmul.f32 5.9604645e-08, %v166_v58 }
  0x5b   :  { %316 = vlog2.f32 %v208_v57 }
  0x5c   :  { %318 = vlog2.f32 %v167_v59 }
  0x65   :  { %v317_v60 = vpop.eup %316 }
  0x66   :  { %v210_v61 = vmul.f32 0.6931472, %v317_v60  ;;  %v319_v62 = vpop.eup %318 }
  0x67   :  { %v169_v0 = vmul.f32 0.6931472, %v319_v62 }
  0x68   :  { %v211_v63 = vsub.f32 0.0, %v210_v61 }
  0x69   :  { %v170_v2 = vsub.f32 0.0, %v169_v0 }
  0x6a   :  { %320 = vlog2.f32 %v211_v63 }
  0x6b   :  { %322 = vlog2.f32 %v170_v2 }
  0x74   :  { %v321_v3 = vpop.eup %320 }
  0x75   :  { %v213_v4 = vmul.f32 0.6931472, %v321_v3  ;;  %v323_v5 = vpop.eup %322 }
  0x76   :  { %v172_v8 = vmul.f32 0.6931472, %v323_v5 }
  0x77   :  { %v214_v7 = vsub.f32 0.0, %v213_v4 }
  0x78   :  { %v173_v14 = vsub.f32 0.0, %v172_v8 }
 0x105   :  { %v129_v9 = vpop.f32.mrb[0].mxu0 }
 0x106   :  { %v130_v10 = vadd.f32 %v281_v6, %v129_v9  ;;  %v299_v12 = vpop.f32.mrb[1].mxu0 }
 0x108   :  { %133 = vst [vmem:[#allocation9] sm:$0xff] %v130_v10  ;;  %v215_v13 = vadd.f32 %v214_v7, %v130_v10  ;;  %v174_v15 = vadd.f32 %v173_v14, %v130_v10 }
 0x10a   :  { %216 = vmax.xlane.f32.xlu0 %v215_v13 }
 0x10e   :  { %175 = vmax.xlane.f32.xlu0 %v174_v15 }
 0x197   :  { %v217_v16 = vpop.xlane.xlu0 %216 }
 0x198   :  { %vm218_vm2 = vcmp.eq.f32.partialorder %v215_v13, %v217_v16 }
 0x199   :  { %v219_v17 = vsel %vm218_vm2, %v526_v11, 128 }
 0x19a   :  { %v221_v18 = vshra.s32 %v219_v17, 16  ;;  %v220_v24 = vand.u32 65535, %v219_v17 }
 0x19b   :  { %v176_v19 = vpop.xlane.xlu0 %175 }
 0x19c   :  { %v177_v20 = vsub.f32 %v174_v15, %v176_v19  ;;  %v223_v21 = vcvt.s32.f32 %v221_v18  ;;  %v222_v26 = vcvt.s32.f32 %v220_v24 }
 0x19e   :  { %v178_v22 = vmul.f32 1.442695, %v177_v20  ;;  %224 = vmin.xlane.f32.xlu1 %v223_v21 }
 0x1a0   :  { %324 = vpow2.f32 %v178_v22 }
 0x1aa   :  { %v325_v23 = vpop.eup %324 }
 0x1ab   :  { %180 = vadd.xlane.f32.xlu1 %v325_v23 }
 0x22b   :  { %v225_v25 = vpop.xlane.xlu1 %224 }
 0x22c   :  { %vm226_vm3 = vcmp.eq.f32.partialorder %v223_v21, %v225_v25 }
 0x22d   :  { %v227_v27 = vsel %vm226_vm3, %v222_v26, inf }
 0x22e   :  { %228 = vmin.xlane.f32.xlu0 %v227_v27 }
 0x238   :  { %v181_v28 = vpop.xlane.xlu1 %180 }
 0x239   :  { %326 = vrcp.f32 %v181_v28 }
 0x243   :  { %v327_v29 = vpop.eup %326 }
 0x244   :  { %383 = shalt.err (!%p380_p6)
}
 0x245   :  { %s384_s9 = scalar_lea.hbm %s575_s4, 128 }
 0x246   :  { %p385_p7 = scmp.ne.s32.totalorder %s575_s4, %s384_s9  ;;  %p388_p8 = scmp.lt.u32.totalorder %s384_s9, %s575_s4 }
 0x248   :  { %p390_p9 = pnand %p388_p8, %p385_p7 }
 0x24a   :  { %393 = shalt.err (!%p390_p9)
}
 0x24b   :  { %247 = dma.vmem_to_hbm [thread:$0]  %s245_s29, 128, %s575_s4, [#allocation6]   ;;  %v183_v30 = vmul.f32 %v327_v29, %v325_v23 }
 0x24c   :  { %s394_s16 = scalar_lea.vmem %s255_s27, 128  ;;  %p399_p11 = scmp.lt.s32.totalorder %s255_s27, %s255_s27 }
 0x24d   :  { %184 = vst [vmem:[#allocation10] sm:$0xff] %v183_v30  ;;  %p395_p10 = scmp.ne.s32.totalorder %s255_s27, %s394_s16  ;;  %p400_p12 = scmp.lt.s32.totalorder %s394_s16, %s394_s16 }
 0x24f   :  { %p401_p13 = por %p400_p12, %p399_p11 }
 0x251   :  { %p402_p0 = pnand %p401_p13, %p395_p10 }
 0x253   :  { %405 = shalt.err (!%p402_p0)
}
 0x254   :  { %s406_s1 = scalar_lea.hbm %s576_s5, 128 }
 0x255   :  { %p407_p1 = scmp.ne.s32.totalorder %s576_s5, %s406_s1  ;;  %p410_p2 = scmp.lt.u32.totalorder %s406_s1, %s576_s5 }
 0x257   :  { %p412_p3 = pnand %p410_p2, %p407_p1 }
 0x259   :  { %415 = shalt.err (!%p412_p3)
}
 0x25a   :  { %257 = dma.vmem_to_hbm [thread:$0]  %s255_s27, 128, %s576_s5, [#allocation11]   ;;  %v231_v31 = vcvt.f32.s32 %v225_v25 }
 0x25b   :  { %s455_s23 = smov [#allocation12]  }
 0x25c   :  { %v232_v33 = vshll.u32 %v231_v31, 16  ;;  %s264_s24 = sshll.u32 %s455_s23, 4  ;;  %s265_s24 = int_to_ptr.vmem [resolvable:$true] %s264_s24 }
 0x25d   :  { %s416_s25 = scalar_lea.vmem %s265_s24, 128  ;;  %p421_p5 = scmp.lt.s32.totalorder %s265_s24, %s265_s24 }
 0x25e   :  { %p417_p4 = scmp.ne.s32.totalorder %s265_s24, %s416_s25  ;;  %p422_p6 = scmp.lt.s32.totalorder %s416_s25, %s416_s25 }
 0x260   :  { %p423_p7 = por %p422_p6, %p421_p5 }
 0x262   :  { %p424_p8 = pnand %p423_p7, %p417_p4 }
 0x2bb   :  { %v229_v32 = vpop.xlane.xlu0 %228 }
 0x2bc   :  { %v230_v34 = vcvt.f32.s32 %v229_v32 }
 0x2be   :  { %v233_v35 = vadd.s32 %v232_v33, %v230_v34 }
 0x2c0   :  { %vm234_vm4 = vcmp.eq.s32.totalorder %v526_v11, %v233_v35 }
 0x2c1   :  { %v283_v36 = vsel %vm234_vm4, 1.0, %v452_v1 }
 0x2c2   :  { %237 = vst [vmem:[#allocation12] sm:$0xff] %v283_v36 }
 0x2c3   :  { %427 = shalt.err (!%p424_p8)
}
 0x2c4   :  { %s428_s26 = scalar_lea.hbm %s577_s6, 128 }
 0x2c5   :  { %p429_p9 = scmp.ne.s32.totalorder %s577_s6, %s428_s26  ;;  %p432_p10 = scmp.lt.u32.totalorder %s428_s26, %s577_s6 }
 0x2c7   :  { %p434_p11 = pnand %p432_p10, %p429_p9 }
 0x2c9   :  { %437 = shalt.err (!%p434_p11)
}
 0x2ca   :  { %267 = dma.vmem_to_hbm [thread:$0]  %s265_s24, 128, %s577_s6, [#allocation11]  }
 0x2cb   :  { %442 = dma.done.wait [#allocation6], 128  }
 0x2cc   :  { %443 = vsyncadd [#allocation6], 4294967168 }
 0x2cd   :  { %444 = dma.done.wait [#allocation11], 256  }
 0x2ce   :  { %445 = vsyncadd [#allocation11], 4294967040 }
 0x2cf   :  { %277 = vsyncpa [#allocation5], 1 }
 0x2d0   :  { %278 = vsyncpa [#allocation8], 1 }
 0x2d1   :  { %279 = vsyncpa [#allocation6], 1 }
 0x2d2   :  { %280 = vsyncpa [#allocation11], 1 }

</bundles_post_ra>
